<compile_context>
chip_gen: v6e
topology: v6e:2x2x1
jax: 0.10.0
libtpu: 0.0.40
codegen_flags: <defaults>
</compile_context>

<pallas_src>
import math
import functools

import jax
import jax.numpy as jnp
from jax import lax
from jax.experimental import pallas as pl
from jax.experimental.pallas import tpu as pltpu


def _round_up(x, m):
    return ((x + m - 1) // m) * m


def _encoding_kernel(ids_ref, emb_ref, pos_ref, out_ref, *, scale):
    # ids_ref: (1, T, 1) int32   token ids for this (batch, seq-tile)
    # emb_ref: (Vp, E)   f32     full vocab-padded embedding table (VMEM resident)
    # pos_ref: (T, E)    f32     contiguous positional rows for this seq-tile
    # out_ref: (1, T, E) f32
    ids_col = ids_ref[0]                      # (T, 1) int32, ids along sublanes
    T = ids_col.shape[0]
    Vp = emb_ref.shape[0]

    # Gather via one-hot matmul on the MXU: (T, Vp) @ (Vp, E) -> (T, E).
    iota_v = lax.broadcasted_iota(jnp.int32, (T, Vp), 1)
    one_hot = (ids_col == iota_v).astype(jnp.float32)
    gathered = jnp.dot(
        one_hot, emb_ref[...],
        precision=lax.Precision.HIGHEST,          # exact row selection in f32
        preferred_element_type=jnp.float32)

    out_ref[0] = (pos_ref[...] + gathered * jnp.float32(scale)).astype(out_ref.dtype)
    # TODO(synk): nn.Dropout is identity in eval mode; a training-mode dropout
    # would use pltpu.prng_seed / pltpu.stateful_bernoulli here.


def encoding_forward(ids, embed_table, pos_table, *, seq_tile=128):
    """ids: (B, S) int32; embed_table: (V, E); pos_table: (L, E) -> (B, S, E) f32."""
    B, S = ids.shape
    V, E = embed_table.shape
    L = pos_table.shape[0]
    assert S <= L, "sequence length exceeds max_length of positional table"
    scale = math.sqrt(E)

    # Sequence tile: multiple of 8 sublanes, capped at `seq_tile`.
    T = min(seq_tile, _round_up(S, 8))
    Sp = _round_up(S, T)
    # Pad vocab to a multiple of 128 so the one-hot contraction is MXU-friendly.
    Vp = _round_up(V, 128)

    # TODO(synk): for very large vocabularies (Vp*E*4 approaching the scoped
    # VMEM budget, especially on v7x's 64 MiB VMEM) switch to a manual
    # double-buffered per-row DMA gather (memory_space=pl.ANY + make_async_copy)
    # instead of the resident-table one-hot path.

    ids_p = jnp.zeros((B, Sp), jnp.int32).at[:, :S].set(ids.astype(jnp.int32))
    ids3 = ids_p.reshape(B, Sp, 1)                         # (T,1) blocks: ids on sublanes
    emb_p = jnp.zeros((Vp, E), jnp.float32).at[:V].set(embed_table.astype(jnp.float32))
    pos_p = jnp.zeros((Sp, E), jnp.float32).at[:S].set(pos_table[:S].astype(jnp.float32))

    kernel = functools.partial(_encoding_kernel, scale=scale)

    grid_spec = pltpu.PrefetchScalarGridSpec(
        num_scalar_prefetch=0,
        grid=(B, Sp // T),
        in_specs=[
            # token ids for this (batch, seq-tile)
            pl.BlockSpec((1, T, 1), lambda b, st: (b, st, 0)),
            # full embedding table; constant block index -> fetched once, stays resident
            pl.BlockSpec((Vp, E), lambda b, st: (0, 0)),
            # positional rows for this seq-tile: contiguous, no gather needed
            pl.BlockSpec((T, E), lambda b, st: (st, 0)),
        ],
        out_specs=pl.BlockSpec((1, T, E), lambda b, st: (b, st, 0)),
    )

    out = pl.pallas_call(
        kernel,
        grid_spec=grid_spec,
        out_shape=jax.ShapeDtypeStruct((B, Sp, E), jnp.float32),
        compiler_params=pltpu.CompilerParams(
            dimension_semantics=("parallel", "parallel")),
    )(ids3, emb_p, pos_p)

    return out[:, :S, :]


if __name__ == "__main__":
    # Module hyper-parameters (small, consistent with the forward pass).
    vocab_size = 32
    emb_size = 128        # lane-aligned embedding width
    max_length = 16
    B, S = 2, 8

    key = jax.random.PRNGKey(0)
    k_emb, k_pos, k_ids = jax.random.split(key, 3)

    # Deterministic parameter init (N(0,1), like nn.Embedding default).
    embed_table = jax.random.normal(k_emb, (vocab_size, emb_size), jnp.float32)
    embed_table = embed_table.at[0].set(0.0)   # padding_idx=0 -> row 0 is zeros
    pos_table = jax.random.normal(k_pos, (max_length, emb_size), jnp.float32)

    # Token ids (include some padding-id zeros).
    ids = jax.random.randint(k_ids, (B, S), 0, vocab_size, dtype=jnp.int32)
    ids = ids.at[0, 0].set(0)

    out = encoding_forward(ids, embed_table, pos_table)
    out = jax.block_until_ready(out)

    # Pure-JAX reference check.
    ref = pos_table[jnp.arange(S)][None, :, :] + embed_table[ids] * math.sqrt(emb_size)
    assert out.shape == (B, S, emb_size)
    assert jnp.allclose(out, ref, atol=1e-5, rtol=1e-5)

    print("KERNEL_OK")
</pallas_src>

<mosaic_0001>
module attributes {stable_mosaic.version = 11 : i64} {
  func.func @_encoding_kernel(%arg0: i32, %arg1: i32, %arg2: memref<1x8x1xi32, #tpu.memory_space<vmem>>, %arg3: memref<128x128xf32, #tpu.memory_space<vmem>>, %arg4: memref<8x128xf32, #tpu.memory_space<vmem>>, %arg5: memref<1x8x128xf32, #tpu.memory_space<vmem>>) attributes {dimension_semantics = [#tpu.dimension_semantics<parallel>, #tpu.dimension_semantics<parallel>], iteration_bounds = array<i64: 2, 1>, scalar_prefetch = 0 : i64, scratch_operands = 0 : i64, tpu.core_type = #tpu.core_type<tc>, window_params = [{transform_indices = @transform_0, window_bounds = array<i64: 1, 8, 1>}, {pipeline_mode = #tpu.pipeline_mode<synchronous>, transform_indices = @transform_1, window_bounds = array<i64: 128, 128>}, {transform_indices = @transform_2, window_bounds = array<i64: 8, 128>}, {transform_indices = @transform_3, window_bounds = array<i64: 1, 8, 128>}]} {
    %c0 = arith.constant 0 : index
    %c0_0 = arith.constant 0 : index
    %c0_1 = arith.constant 0 : index
    %0 = vector.load %arg2[%c0, %c0_0, %c0_1] : memref<1x8x1xi32, #tpu.memory_space<vmem>>, vector<1x8x1xi32>
    %1 = vector.shape_cast %0 : vector<1x8x1xi32> to vector<8x1xi32>
    %2 = tpu.iota {dimensions = array<i32: 1>} : vector<8x128xi32>
    %3 = vector.broadcast %1 : vector<8x1xi32> to vector<8x128xi32>
    %4 = arith.cmpi eq, %3, %2 : vector<8x128xi32>
    %5 = arith.extui %4 : vector<8x128xi1> to vector<8x128xi32>
    %6 = arith.sitofp %5 : vector<8x128xi32> to vector<8x128xf32>
    %c0_2 = arith.constant 0 : index
    %c0_3 = arith.constant 0 : index
    %7 = vector.load %arg3[%c0_2, %c0_3] : memref<128x128xf32, #tpu.memory_space<vmem>>, vector<128x128xf32>
    %cst = arith.constant dense<0.000000e+00> : vector<8x128xf32>
    %8 = tpu.matmul %6, %7, %cst {dimension_numbers = #tpu.dot_dimension_numbers<[1], [0], [0], [1], [0, 0, 1, 1], [], []>, precision = #tpu.contract_precision<fp32>} : vector<8x128xf32>, vector<128x128xf32>, vector<8x128xf32> -> vector<8x128xf32>
    %c0_4 = arith.constant 0 : index
    %c0_5 = arith.constant 0 : index
    %9 = vector.load %arg4[%c0_4, %c0_5] : memref<8x128xf32, #tpu.memory_space<vmem>>, vector<8x128xf32>
    %cst_6 = arith.constant 11.3137083 : f32
    %10 = vector.broadcast %cst_6 : f32 to vector<8x128xf32>
    %11 = arith.mulf %8, %10 : vector<8x128xf32>
    %12 = arith.addf %9, %11 : vector<8x128xf32>
    %c0_7 = arith.constant 0 : index
    %c0_8 = arith.constant 0 : index
    %c0_9 = arith.constant 0 : index
    %13 = vector.load %arg5[%c0_7, %c0_8, %c0_9] : memref<1x8x128xf32, #tpu.memory_space<vmem>>, vector<1x8x128xf32>
    %14 = vector.shape_cast %13 : vector<1x8x128xf32> to vector<8x128xf32>
    %15 = vector.shape_cast %12 : vector<8x128xf32> to vector<1x8x128xf32>
    tpu.vector_store %arg5[%c0_7, %c0_8, %c0_9], %15 {strides = array<i32>} : memref<1x8x128xf32, #tpu.memory_space<vmem>>, vector<1x8x128xf32>,
    return
  }
  func.func @transform_0(%arg0: i32, %arg1: i32) -> (i32, i32, i32) {
    %c0_i32 = arith.constant 0 : i32
    %c0_i32_0 = arith.constant 0 : i32
    return %arg0, %arg1, %c0_i32 : i32, i32, i32
  }
  func.func @transform_1(%arg0: i32, %arg1: i32) -> (i32, i32) {
    %c0_i32 = arith.constant 0 : i32
    %c0_i32_0 = arith.constant 0 : i32
    %c0_i32_1 = arith.constant 0 : i32
    return %c0_i32, %c0_i32_0 : i32, i32
  }
  func.func @transform_2(%arg0: i32, %arg1: i32) -> (i32, i32) {
    %c0_i32 = arith.constant 0 : i32
    %c0_i32_0 = arith.constant 0 : i32
    return %arg1, %c0_i32 : i32, i32
  }
  func.func @transform_3(%arg0: i32, %arg1: i32) -> (i32, i32, i32) {
    %c0_i32 = arith.constant 0 : i32
    %c0_i32_0 = arith.constant 0 : i32
    return %arg0, %arg1, %c0_i32 : i32, i32, i32
  }
}

</mosaic_0001>

<bundles_post_ra>
// kernel: tpu_custom_call.1
= control target key start
LH: loop header
LB: loop body
LE: loop exit
PB: predicated region body
PF: predicated region fallthrough
CT: control target
= control target key end

     0   :  { %8 = vsyncpa [#allocation3], 0  ;;  %s2043_s0 = inlined_call_operand.vmem [shape: s32[2,8,1], index: 0, kind: input, shape index: {}]   ;;  %s2044_s1 = inlined_call_operand.hbm [shape: f32[128,128], index: 1, kind: input, shape index: {}]   ;;  %s2045_s2 = inlined_call_operand.vmem [shape: f32[8,128], index: 2, kind: input, shape index: {}]   ;;  %s2046_s3 = inlined_call_operand.hbm [shape: f32[2,8,128], index: 3, kind: output, shape index: {}]  }
   0x1   :  { %9 = vsyncpa [#allocation4], 0 }
   0x2   :  { %11 = vsyncpa [#allocation4 + $0x1], 0  ;;  %s1545_s12 = smov 0   ;;  %s1547_s13 = smov 0  }
   0x3   :  { %s1549_s14 = smov 0   ;;  %s1551_s15 = smov 0  }
   0x4   :  { %s1553_s16 = smov 0   ;;  %s1555_s17 = smov 0  }
   0x5 LB: > { %s1006_s18 = sadd.s32 4294967295, %s1515_s17   ;;  %s1007_s19 = sadd.s32 4294967294, %s1515_s17   ;;  %s1515_s17 = sphi %s1555_s17, %s17_s17   ;;  %s1511_s16 = sphi %s1553_s16, %s2055_s16   ;;  %s1507_s15 = sphi %s1551_s15, %s2054_s15   ;;  %s1503_s14 = sphi %s1549_s14, %s2053_s14   ;;  %s1499_s13 = sphi %s1547_s13, %s2052_s13   ;;  %s1495_s12 = sphi %s1545_s12, %s2051_s12  }
   0x6   : > { %s29_s20 = sadd.s32 1, %s1511_s16  ;;  %s113_s21 = sadd.s32 1, %s1503_s14 }
   0x7   : > { %p31_p0 = scmp.ge.s32.totalorder %s29_s20, 2  ;;  %p123_p1 = scmp.ne.s32.totalorder %s1503_s14, %s1499_s13 }
   0x8   : > { %p124_p2 = scmp.eq.s32.totalorder %s1006_s18, 1  ;;  %p129_p3 = scmp.ne.s32.totalorder %s1499_s13, %s1495_s12 }
   0x9   : > { %s2057_s20 = smov (%p31_p0, %s29_s20), 0  ;;  %p130_p5 = scmp.eq.s32.totalorder %s1007_s19, 1 }
   0xa   : > { %p1585_p4 = por %p124_p2, %p123_p1  ;;  %s108_s23 = ssub.s32 %s1511_s16, %s2057_s20 }
   0xb   : > { %p1008_p6 = scmp.ge.s32.totalorder %s1515_s17, 1  ;;  %p111_p7 = scmp.eq.s32.totalorder %s108_s23, 0 }
   0xc   : > { %p1592_p8 = por %p130_p5, %p129_p3  ;;  %p137_p9 = scmp.lt.s32.totalorder %s1515_s17, 3 }
   0xd   : > { %s1598_s25 = scalar_select %p111_p7, %s1503_s14, %s113_s21  }
   0xe   : > { %p1600_p10 = pnand %p1008_p6, %p137_p9  ;;  %p1604_p11 = scmp.eq.s32.totalorder %s1006_s18, 0 }
   0xf   : > { %s1517_s28 = smov [#allocation2]  }
  0x10   : > { %p1342_p12 = pneg %p1600_p10  ;;  %s149_s29 = sshll.u32 %s1517_s28, 4  ;;  %s150_s29 = int_to_ptr.vmem [resolvable:$true] %s149_s29 }
  0x11   : > { %s1420_s30 = scalar_lea.vmem %s150_s29, 2048  ;;  %p1428_p5 = scmp.lt.s32.totalorder %s150_s29, %s150_s29 }
  0x12   : > { %p1343_p13 = pnand %p1604_p11, %p1342_p12  ;;  %p1421_p1 = scmp.ne.s32.totalorder %s150_s29, %s1420_s30 }
  0x13   : > { %p1429_p6 = scmp.lt.s32.totalorder %s1420_s30, %s1420_s30 }
  0x14   : > { %p1411_p0 = pneg %p1343_p13 }
  0x15   : > { %p1430_p7 = por %p1429_p6, %p1428_p5 }
  0x16   : > { %p1423_p2 = pnand %p1421_p1, %p1411_p0 }
  0x18   : > { %p1424_p3 = pneg %p1423_p2 }
  0x1a   : > { %p1431_p9 = pnand %p1430_p7, %p1424_p3 }
  0x1c   : > { %1434 = shalt.err (!%p1431_p9)
}
  0x1d   : > { %s1518_s4 = smov 128   ;;  %s1519_s5 = smov 8  }
  0x1e   : > { %1345 = dma.hbm_to_vmem [thread:$0]  (!%p1343_p13), %s2044_s1, 2048, %s150_s29, [#allocation3], %s1518_s4, %s1518_s4, %s1519_s5  }
  0x1f   : > { %182 = sbr.rel (%p1600_p10) target bundleno = 458 (0x1ca), region = 32 }
  0x24   : > { %1486 = dma.done.wait (%p1604_p11), [#allocation3], 2048  }
  0x25   : > { %1488 = vsyncadd (%p1604_p11), [#allocation3], 4294965248  ;;  %p212_p12 = scmp.lt.s32.totalorder %s1507_s15, 1  ;;  %v1520_v0 = vmov 0   ;;  %v1521_v1 = vmov 0.0   ;;  %vm1522_vm0 = vmmov 0  }
  0x26   : > { %1408 = vset.pattern.permute.xlu0 %v1520_v0  ;;  %1161 = vmatprep.subr.mxu1 %v1521_v1  ;;  %v247_v3 = vld [vmem:[#allocation2 + $0x78] sm:$0xff]  ;;  %v246_v4 = vld [vmem:[#allocation2 + $0x70] sm:$0xff]  ;;  %v245_v7 = vld [vmem:[#allocation2 + $0x68] sm:$0xff]  ;;  %s209_s19 = sand.u32 1, %s1499_s13   ;;  %s1021_s27 = sshll.u32 %s1507_s15, 7 }
  0x27   : > { %s213_s8 = scalar_select %p212_p12, %s1507_s15, 1  ;;  %1126 = vmatprep.subr.mxu0 %v1521_v1  ;;  %1193 = vmatprep.mubr.msk.f32.mxu1 %vm1522_vm0, %v1521_v1  ;;  %v1632_v5 = vand.u32 4294901760, %v247_v3  ;;  %v1634_v6 = vand.u32 4294901760, %v246_v4  ;;  %v244_v8 = vld [vmem:[#allocation2 + $0x60] sm:$0xff]  ;;  %v243_v9 = vld [vmem:[#allocation2 + $0x58] sm:$0xff]  ;;  %v1636_v10 = vand.u32 4294901760, %v245_v7 }
  0x28   : > { %1158 = vmatprep.mubr.msk.f32.mxu0 %vm1522_vm0, %v1521_v1  ;;  %v1638_v11 = vand.u32 4294901760, %v244_v8  ;;  %v1640_v12 = vand.u32 4294901760, %v243_v9  ;;  %v242_v13 = vld [vmem:[#allocation2 + $0x50] sm:$0xff]  ;;  %v241_v14 = vld [vmem:[#allocation2 + $0x48] sm:$0xff]  ;;  %v240_v15 = vld [vmem:[#allocation2 + $0x40] sm:$0xff]  ;;  %s1014_s21 = sshll.u32 %s209_s19, 3  ;;  %s906_s5 = scalar_lea.hbm %s2046_s3, %s1021_s27 }
  0x29   : > { %s1015_s9 = sshll.u32 %s213_s8, 3  ;;  %v1643_v16 = vsub.f32 %v247_v3, %v1632_v5  ;;  %v1646_v17 = vsub.f32 %v246_v4, %v1634_v6  ;;  %1127 = vmatpush3.msra.mxu0 %v1632_v5  ;;  %v1649_v18 = vand.u32 4294901760, %v242_v13  ;;  %v1651_v19 = vand.u32 4294901760, %v241_v14  ;;  %v239_v36 = vld [vmem:[#allocation2 + $0x38] sm:$0xff]  ;;  %v238_v37 = vld [vmem:[#allocation2 + $0x30] sm:$0xff]  ;;  %v237_v41 = vld [vmem:[#allocation2 + $0x28] sm:$0xff] }
  0x2a   : > { %s218_s18 = scalar_lea.vmem %s2043_s0, %s1015_s9  ;;  %v1654_v20 = vsub.f32 %v245_v7, %v1636_v10  ;;  %v1657_v21 = vsub.f32 %v244_v8, %v1638_v11  ;;  %v1660_v22 = vsub.f32 %v243_v9, %v1640_v12  ;;  %1128 = vmatprep.subr.mxu0 %v1521_v1  ;;  %v1663_v23 = vand.u32 4294901760, %v240_v15  ;;  %v236_v43 = vld [vmem:[#allocation2 + $0x20] sm:$0xff]  ;;  %v235_v51 = vld [vmem:[#allocation2 + $0x18] sm:$0xff]  ;;  %v234_v57 = vld [vmem:[#allocation2 + $0x10] sm:$0xff]  ;;  %s211_s28 = scalar_lea.vmem [#allocation5], %s1014_s21 }
  0x2b   : > { %v223_v2 = vld [vmem:[%s218_s18] sm:$0xff]  ;;  %v342_v24 = vand.u32 4294901760, %v1643_v16  ;;  %v349_v25 = vand.u32 4294901760, %v1646_v17  ;;  %v1668_v26 = vsub.f32 %v242_v13, %v1649_v18  ;;  %1129 = vmatpush3.msra.mxu0 %v1634_v6  ;;  %v1675_v29 = vsub.f32 %v241_v14, %v1651_v19  ;;  %v233_v63 = vld [vmem:[#allocation2 + $0x8] sm:$0xff]  ;;  %s908_s29 = sshll.u32 %s211_s28, 4  ;;  %s894_s6 = scalar_lea.sflag [#allocation4], %s209_s19  ;;  %s909_s29 = int_to_ptr.vmem [resolvable:$true] %s908_s29 }
  0x2c   : > { %227 = vperm.xlu0 %1408, %v223_v2   ;;  %v356_v27 = vand.u32 4294901760, %v1654_v20  ;;  %v363_v28 = vand.u32 4294901760, %v1657_v21  ;;  %1130 = vmatprep.subr.mxu0 %v1521_v1  ;;  %v370_v32 = vand.u32 4294901760, %v1660_v22  ;;  %v1691_v35 = vsub.f32 %v240_v15, %v1663_v23  ;;  %v232_v8 = vld [vmem:[#allocation2] sm:$0xff]  ;;  %s1435_s7 = scalar_lea.vmem %s909_s29, 128  ;;  %s1524_s8 = smov [#allocation5]  }
  0x2d   : > { %v343_v30 = vsub.f32 %v1643_v16, %v342_v24  ;;  %v350_v31 = vsub.f32 %v1646_v17, %v349_v25  ;;  %1131 = vmatpush3.msra.mxu0 %v1636_v10  ;;  %v377_v34 = vand.u32 4294901760, %v1668_v26  ;;  %v384_v42 = vand.u32 4294901760, %v1675_v29  ;;  %p1436_p10 = scmp.ne.s32.totalorder %s909_s29, %s1435_s7  ;;  %s1439_s9 = sshll.u32 %s1524_s8, 4  ;;  %s1440_s9 = int_to_ptr.vmem [resolvable:$false] %s1439_s9 }
  0x2e   : > { %v357_v33 = vsub.f32 %v1654_v20, %v356_v27  ;;  %1132 = vmatprep.subr.mxu0 %v1521_v1  ;;  %v364_v40 = vsub.f32 %v1657_v21, %v363_v28  ;;  %v371_v45 = vsub.f32 %v1660_v22, %v370_v32  ;;  %v1702_v46 = vand.u32 4294901760, %v239_v36  ;;  %s1441_s15 = scalar_lea.vmem %s1440_s9, 256  ;;  %p1442_p0 = scmp.lt.s32.totalorder %s909_s29, %s1440_s9 }
  0x2f   : > { %v344_v38 = vand.u32 4294901760, %v343_v30  ;;  %v351_v39 = vand.u32 4294901760, %v350_v31  ;;  %1133 = vmatpush3.msra.mxu0 %v1638_v11  ;;  %v1705_v47 = vand.u32 4294901760, %v238_v37  ;;  %v378_v48 = vsub.f32 %v1668_v26, %v377_v34  ;;  %p1437_p11 = pnand %p1436_p10, %p1585_p4  ;;  %p1443_p1 = scmp.lt.s32.totalorder %s1441_s15, %s1435_s7 }
  0x30   : > { %1134 = vmatprep.subr.mxu0 %v1521_v1  ;;  %v358_v44 = vand.u32 4294901760, %v357_v33  ;;  %v391_v49 = vand.u32 4294901760, %v1691_v35  ;;  %v1713_v50 = vand.u32 4294901760, %v237_v41  ;;  %v365_v52 = vand.u32 4294901760, %v364_v40 }
  0x31   : > { %1162 = vmatpush3.msra.mxu1 %v344_v38  ;;  %1135 = vmatpush3.msra.mxu0 %v1640_v12  ;;  %v1716_v53 = vsub.f32 %v239_v36, %v1702_v46  ;;  %v1719_v54 = vsub.f32 %v238_v37, %v1705_v47  ;;  %v1722_v55 = vand.u32 4294901760, %v236_v43  ;;  %v385_v56 = vsub.f32 %v1675_v29, %v384_v42  ;;  %p1438_p13 = pneg %p1437_p11  ;;  %p1444_p2 = por %p1443_p1, %p1442_p0 }
  0x32   : > { %1163 = vmatprep.subr.mxu1 %v1521_v1  ;;  %1136 = vmatprep.subr.mxu0 %v1521_v1  ;;  %v372_v58 = vand.u32 4294901760, %v371_v45  ;;  %v1731_v60 = vsub.f32 %v237_v41, %v1713_v50  ;;  %v1734_v61 = vand.u32 4294901760, %v235_v51  ;;  %v392_v62 = vsub.f32 %v1691_v35, %v391_v49 }
  0x33   : > { %1164 = vmatpush3.msra.mxu1 %v351_v39  ;;  %1137 = vmatpush3.msra.mxu0 %v1649_v18  ;;  %v398_v59 = vand.u32 4294901760, %v1716_v53  ;;  %v379_v0 = vand.u32 4294901760, %v378_v48  ;;  %v405_v2 = vand.u32 4294901760, %v1719_v54  ;;  %v1743_v3 = vsub.f32 %v236_v43, %v1722_v55  ;;  %p1445_p3 = pnand %p1444_p2, %p1438_p13 }
  0x34   : > { %1165 = vmatprep.subr.mxu1 %v1521_v1  ;;  %1138 = vmatprep.subr.mxu0 %v1521_v1  ;;  %v1746_v4 = vand.u32 4294901760, %v234_v57  ;;  %v386_v7 = vand.u32 4294901760, %v385_v56  ;;  %v412_v13 = vand.u32 4294901760, %v1731_v60  ;;  %v1755_v14 = vsub.f32 %v235_v51, %v1734_v61 }
  0x35   : > { %1166 = vmatpush3.msra.mxu1 %v358_v44  ;;  %1139 = vmatpush3.msra.mxu0 %v1651_v19  ;;  %v399_v9 = vsub.f32 %v1716_v53, %v398_v59  ;;  %v1758_v15 = vand.u32 4294901760, %v233_v63  ;;  %v393_v30 = vand.u32 4294901760, %v392_v62  ;;  %v406_v31 = vsub.f32 %v1719_v54, %v405_v2 }
  0x36   : > { %1167 = vmatprep.subr.mxu1 %v1521_v1  ;;  %1140 = vmatprep.subr.mxu0 %v1521_v1  ;;  %v419_v33 = vand.u32 4294901760, %v1743_v3  ;;  %v1767_v36 = vsub.f32 %v234_v57, %v1746_v4  ;;  %v1770_v37 = vand.u32 4294901760, %v232_v8  ;;  %v413_v39 = vsub.f32 %v1731_v60, %v412_v13 }
  0x37   : > { %1168 = vmatpush3.msra.mxu1 %v365_v52  ;;  %1141 = vmatpush3.msra.mxu0 %v1663_v23  ;;  %v400_v38 = vand.u32 4294901760, %v399_v9  ;;  %v426_v40 = vand.u32 4294901760, %v1755_v14  ;;  %v1779_v41 = vsub.f32 %v233_v63, %v1758_v15  ;;  %v407_v43 = vand.u32 4294901760, %v406_v31 }
  0x38   : > { %1169 = vmatprep.subr.mxu1 %v1521_v1  ;;  %1142 = vmatprep.subr.mxu0 %v1521_v1  ;;  %v420_v44 = vsub.f32 %v1743_v3, %v419_v33  ;;  %v433_v45 = vand.u32 4294901760, %v1767_v36  ;;  %v1789_v48 = vsub.f32 %v232_v8, %v1770_v37  ;;  %v414_v51 = vand.u32 4294901760, %v413_v39 }
  0x39   : > { %1170 = vmatpush3.msra.mxu1 %v372_v58  ;;  %1143 = vmatpush3.msra.mxu0 %v1702_v46  ;;  %v427_v52 = vsub.f32 %v1755_v14, %v426_v40  ;;  %v440_v56 = vand.u32 4294901760, %v1779_v41  ;;  %v224_v31 = vlaneseq }
  0x3a   : > { %1171 = vmatprep.subr.mxu1 %v1521_v1  ;;  %1144 = vmatprep.subr.mxu0 %v1521_v1  ;;  %v421_v57 = vand.u32 4294901760, %v420_v44  ;;  %v434_v58 = vsub.f32 %v1767_v36, %v433_v45  ;;  %v447_v62 = vand.u32 4294901760, %v1789_v48  ;;  %v1523_v44 = vmov 1.0  }
  0x3b   : > { %1172 = vmatpush3.msra.mxu1 %v379_v0  ;;  %1145 = vmatpush3.msra.mxu0 %v1705_v47  ;;  %v428_v63 = vand.u32 4294901760, %v427_v52  ;;  %v441_v0 = vsub.f32 %v1779_v41, %v440_v56 }
  0x3c   : > { %1173 = vmatprep.subr.mxu1 %v1521_v1  ;;  %1146 = vmatprep.subr.mxu0 %v1521_v1  ;;  %v448_v8 = vsub.f32 %v1789_v48, %v447_v62 }
  0x3d   : > { %1174 = vmatpush3.msra.mxu1 %v386_v7  ;;  %1147 = vmatpush3.msra.mxu0 %v1713_v50  ;;  %v435_v7 = vand.u32 4294901760, %v434_v58  ;;  %v442_v9 = vand.u32 4294901760, %v441_v0 }
  0x3e   : > { %1175 = vmatprep.subr.mxu1 %v1521_v1  ;;  %1148 = vmatprep.subr.mxu0 %v1521_v1 }
  0x3f   : > { %1176 = vmatpush3.msra.mxu1 %v393_v30  ;;  %1149 = vmatpush3.msra.mxu0 %v1722_v55  ;;  %v449_v30 = vand.u32 4294901760, %v448_v8 }
  0x40   : > { %1177 = vmatprep.subr.mxu1 %v1521_v1  ;;  %1150 = vmatprep.subr.mxu0 %v1521_v1 }
  0x41   : > { %1178 = vmatpush3.msra.mxu1 %v400_v38  ;;  %1151 = vmatpush3.msra.mxu0 %v1734_v61  ;;  %v1824_v38 = vand.u32 127, %v224_v31 }
  0x42   : > { %1179 = vmatprep.subr.mxu1 %v1521_v1  ;;  %1152 = vmatprep.subr.mxu0 %v1521_v1 }
  0x43   : > { %1180 = vmatpush3.msra.mxu1 %v407_v43  ;;  %1153 = vmatpush3.msra.mxu0 %v1746_v4 }
  0x44   : > { %1181 = vmatprep.subr.mxu1 %v1521_v1  ;;  %1154 = vmatprep.subr.mxu0 %v1521_v1 }
  0x45   : > { %1182 = vmatpush3.msra.mxu1 %v414_v51  ;;  %1155 = vmatpush3.msra.mxu0 %v1758_v15 }
  0x46   : > { %1183 = vmatprep.subr.mxu1 %v1521_v1  ;;  %1156 = vmatprep.subr.mxu0 %v1521_v1 }
  0x47   : > { %1184 = vmatpush3.msra.mxu1 %v421_v57  ;;  %1157 = vmatpush3.msra.mxu0 %v1770_v37 }
  0x48   : > { %1185 = vmatprep.subr.mxu1 %v1521_v1  ;;  %1196 = vmatprep.subr.mxu0 %v1521_v1 }
  0x49   : > { %1186 = vmatpush3.msra.mxu1 %v428_v63 }
  0x4a   : > { %1187 = vmatprep.subr.mxu1 %v1521_v1 }
  0x4b   : > { %1188 = vmatpush3.msra.mxu1 %v435_v7 }
  0x4c   : > { %1189 = vmatprep.subr.mxu1 %v1521_v1 }
  0x4d   : > { %1190 = vmatpush3.msra.mxu1 %v442_v9 }
  0x4e   : > { %1191 = vmatprep.subr.mxu1 %v1521_v1 }
  0x4f   : > { %1192 = vmatpush3.msra.mxu1 %v449_v30 }
  0x50   : > { %1231 = vmatprep.subr.mxu1 %v1521_v1 }
  0xa7   : > { %v1826_v39 = vpop.permute.xlu0 %227 }
  0xa8   : > { %vm229_vm1 = vcmp.eq.s32.totalorder %v1826_v39, %v1824_v38 }
  0xa9   : > { %v1016_v43 = vsel %vm229_vm1, 1.0, %v1521_v1  ;;  %1194 = vmatmul.mubr.msk.f32.vlgmr.msra.gmra.mxu1 %vm229_vm1, %v1523_v44 }
  0xaa   : > { %v1838_v51 = vsub.f32 %v1016_v43, %v1016_v43  ;;  %1232 = vmatpush3.msra.mxu1 %v1632_v5  ;;  %1263 = vmatprep.mubr.msk.f32.mxu1 %vm1522_vm0, %v1521_v1 }
  0xab   : > { %1233 = vmatprep.subr.mxu1 %v1521_v1 }
  0xac   : > { %1234 = vmatpush3.msra.mxu1 %v1634_v6  ;;  %v331_v52 = vand.u32 4294901760, %v1838_v51 }
  0xad   : > { %1235 = vmatprep.subr.mxu1 %v1521_v1 }
  0xae   : > { %1236 = vmatpush3.msra.mxu1 %v1636_v10  ;;  %v332_v57 = vsub.f32 %v1838_v51, %v331_v52 }
  0xaf   : > { %1237 = vmatprep.subr.mxu1 %v1521_v1 }
  0xb0   : > { %1238 = vmatpush3.msra.mxu1 %v1638_v11  ;;  %v333_v58 = vand.u32 4294901760, %v332_v57 }
  0xb1   : > { %1239 = vmatprep.subr.mxu1 %v1521_v1 }
  0xb2   : > { %1240 = vmatpush3.msra.mxu1 %v1640_v12  ;;  %1159 = vmatmul.mubr.f32.vlgmr.msra.gmra.mxu0 %v333_v58 }
  0xb3   : > { %1197 = vmatpush3.msra.mxu0 %v1643_v16  ;;  %1241 = vmatprep.subr.mxu1 %v1521_v1 }
  0xb4   : > { %1198 = vmatprep.subr.mxu0 %v1521_v1  ;;  %1242 = vmatpush3.msra.mxu1 %v1649_v18 }
  0xb5   : > { %1199 = vmatpush3.msra.mxu0 %v1646_v17  ;;  %1243 = vmatprep.subr.mxu1 %v1521_v1 }
  0xb6   : > { %1200 = vmatprep.subr.mxu0 %v1521_v1  ;;  %1244 = vmatpush3.msra.mxu1 %v1651_v19 }
  0xb7   : > { %1201 = vmatpush3.msra.mxu0 %v1654_v20  ;;  %1245 = vmatprep.subr.mxu1 %v1521_v1 }
  0xb8   : > { %1202 = vmatprep.subr.mxu0 %v1521_v1  ;;  %1246 = vmatpush3.msra.mxu1 %v1663_v23 }
  0xb9   : > { %1203 = vmatpush3.msra.mxu0 %v1657_v21  ;;  %1247 = vmatprep.subr.mxu1 %v1521_v1 }
  0xba   : > { %1204 = vmatprep.subr.mxu0 %v1521_v1  ;;  %1248 = vmatpush3.msra.mxu1 %v1702_v46 }
  0xbb   : > { %1205 = vmatpush3.msra.mxu0 %v1660_v22  ;;  %1249 = vmatprep.subr.mxu1 %v1521_v1 }
  0xbc   : > { %1206 = vmatprep.subr.mxu0 %v1521_v1  ;;  %1250 = vmatpush3.msra.mxu1 %v1705_v47 }
  0xbd   : > { %1207 = vmatpush3.msra.mxu0 %v1668_v26  ;;  %1251 = vmatprep.subr.mxu1 %v1521_v1 }
  0xbe   : > { %1208 = vmatprep.subr.mxu0 %v1521_v1  ;;  %1252 = vmatpush3.msra.mxu1 %v1713_v50 }
  0xbf   : > { %1209 = vmatpush3.msra.mxu0 %v1675_v29  ;;  %1253 = vmatprep.subr.mxu1 %v1521_v1 }
  0xc0   : > { %1210 = vmatprep.subr.mxu0 %v1521_v1  ;;  %1254 = vmatpush3.msra.mxu1 %v1722_v55 }
  0xc1   : > { %1211 = vmatpush3.msra.mxu0 %v1691_v35  ;;  %1255 = vmatprep.subr.mxu1 %v1521_v1 }
  0xc2   : > { %1212 = vmatprep.subr.mxu0 %v1521_v1  ;;  %1256 = vmatpush3.msra.mxu1 %v1734_v61 }
  0xc3   : > { %1213 = vmatpush3.msra.mxu0 %v1716_v53  ;;  %1257 = vmatprep.subr.mxu1 %v1521_v1 }
  0xc4   : > { %1214 = vmatprep.subr.mxu0 %v1521_v1  ;;  %1258 = vmatpush3.msra.mxu1 %v1746_v4 }
  0xc5   : > { %1215 = vmatpush3.msra.mxu0 %v1719_v54  ;;  %1259 = vmatprep.subr.mxu1 %v1521_v1 }
  0xc6   : > { %1216 = vmatprep.subr.mxu0 %v1521_v1  ;;  %1260 = vmatpush3.msra.mxu1 %v1758_v15 }
  0xc7   : > { %1217 = vmatpush3.msra.mxu0 %v1731_v60  ;;  %1261 = vmatprep.subr.mxu1 %v1521_v1 }
  0xc8   : > { %1218 = vmatprep.subr.mxu0 %v1521_v1  ;;  %1262 = vmatpush3.msra.mxu1 %v1770_v37 }
  0xc9   : > { %1219 = vmatpush3.msra.mxu0 %v1743_v3  ;;  %1264 = vmatmul.mubr.f32.vlgmr.msra.gmra.mxu1 %v331_v52 }
  0xca   : > { %1301 = vmatprep.subr.mxu1 %v1521_v1  ;;  %1220 = vmatprep.subr.mxu0 %v1521_v1 }
  0xcb   : > { %1302 = vmatpush3.msra.mxu1 %v1632_v5  ;;  %1221 = vmatpush3.msra.mxu0 %v1755_v14 }
  0xcc   : > { %1303 = vmatprep.subr.mxu1 %v1521_v1  ;;  %1222 = vmatprep.subr.mxu0 %v1521_v1 }
  0xcd   : > { %1304 = vmatpush3.msra.mxu1 %v1634_v6  ;;  %1223 = vmatpush3.msra.mxu0 %v1767_v36 }
  0xce   : > { %1305 = vmatprep.subr.mxu1 %v1521_v1  ;;  %1224 = vmatprep.subr.mxu0 %v1521_v1 }
  0xcf   : > { %1306 = vmatpush3.msra.mxu1 %v1636_v10  ;;  %1225 = vmatpush3.msra.mxu0 %v1779_v41 }
  0xd0   : > { %1307 = vmatprep.subr.mxu1 %v1521_v1  ;;  %1226 = vmatprep.subr.mxu0 %v1521_v1 }
  0xd1   : > { %1308 = vmatpush3.msra.mxu1 %v1638_v11  ;;  %1227 = vmatpush3.msra.mxu0 %v1789_v48 }
  0xd2   : > { %1228 = vmatprep.mubr.msk.f32.mxu0 %vm1522_vm0, %v1521_v1  ;;  %1309 = vmatprep.subr.mxu1 %v1521_v1 }
  0xd3   : > { %1229 = vmatmul.mubr.f32.vlgmr.msra.gmra.mxu0 %v1838_v51  ;;  %1266 = vmatprep.subr.mxu0 %v1521_v1 }
  0xd4   : > { %1310 = vmatpush3.msra.mxu1 %v1640_v12  ;;  %1267 = vmatpush3.msra.mxu0 %v342_v24 }
  0xd5   : > { %1311 = vmatprep.subr.mxu1 %v1521_v1  ;;  %1268 = vmatprep.subr.mxu0 %v1521_v1 }
  0xd6   : > { %1312 = vmatpush3.msra.mxu1 %v1649_v18  ;;  %1269 = vmatpush3.msra.mxu0 %v349_v25 }
  0xd7   : > { %1313 = vmatprep.subr.mxu1 %v1521_v1  ;;  %1270 = vmatprep.subr.mxu0 %v1521_v1 }
  0xd8   : > { %1314 = vmatpush3.msra.mxu1 %v1651_v19  ;;  %1271 = vmatpush3.msra.mxu0 %v356_v27  ;;  %v889_v27 = vld [vmem:[%s2045_s2] sm:$0xff] }
  0xd9   : > { %1315 = vmatprep.subr.mxu1 %v1521_v1  ;;  %1272 = vmatprep.subr.mxu0 %v1521_v1 }
  0xda   : > { %1316 = vmatpush3.msra.mxu1 %v1663_v23  ;;  %1273 = vmatpush3.msra.mxu0 %v363_v28 }
  0xdb   : > { %1317 = vmatprep.subr.mxu1 %v1521_v1  ;;  %1274 = vmatprep.subr.mxu0 %v1521_v1 }
  0xdc   : > { %1318 = vmatpush3.msra.mxu1 %v1702_v46  ;;  %1275 = vmatpush3.msra.mxu0 %v370_v32 }
  0xdd   : > { %1319 = vmatprep.subr.mxu1 %v1521_v1  ;;  %1276 = vmatprep.subr.mxu0 %v1521_v1 }
  0xde   : > { %1320 = vmatpush3.msra.mxu1 %v1705_v47  ;;  %1277 = vmatpush3.msra.mxu0 %v377_v34 }
  0xdf   : > { %1321 = vmatprep.subr.mxu1 %v1521_v1  ;;  %1278 = vmatprep.subr.mxu0 %v1521_v1 }
  0xe0   : > { %1322 = vmatpush3.msra.mxu1 %v1713_v50  ;;  %1279 = vmatpush3.msra.mxu0 %v384_v42 }
  0xe1   : > { %1323 = vmatprep.subr.mxu1 %v1521_v1  ;;  %1280 = vmatprep.subr.mxu0 %v1521_v1 }
  0xe2   : > { %1324 = vmatpush3.msra.mxu1 %v1722_v55  ;;  %1281 = vmatpush3.msra.mxu0 %v391_v49 }
  0xe3   : > { %1325 = vmatprep.subr.mxu1 %v1521_v1  ;;  %1282 = vmatprep.subr.mxu0 %v1521_v1 }
  0xe4   : > { %1326 = vmatpush3.msra.mxu1 %v1734_v61  ;;  %1283 = vmatpush3.msra.mxu0 %v398_v59 }
  0xe5   : > { %1327 = vmatprep.subr.mxu1 %v1521_v1  ;;  %1284 = vmatprep.subr.mxu0 %v1521_v1 }
  0xe6   : > { %1328 = vmatpush3.msra.mxu1 %v1746_v4  ;;  %1285 = vmatpush3.msra.mxu0 %v405_v2 }
  0xe7   : > { %1329 = vmatprep.subr.mxu1 %v1521_v1  ;;  %1286 = vmatprep.subr.mxu0 %v1521_v1 }
  0xe8   : > { %1330 = vmatpush3.msra.mxu1 %v1758_v15  ;;  %1287 = vmatpush3.msra.mxu0 %v412_v13 }
  0xe9   : > { %1331 = vmatprep.subr.mxu1 %v1521_v1  ;;  %1288 = vmatprep.subr.mxu0 %v1521_v1 }
  0xea   : > { %1332 = vmatpush3.msra.mxu1 %v1770_v37  ;;  %1333 = vmatprep.mubr.msk.f32.mxu1 %vm1522_vm0, %v1521_v1 }
  0xeb   : > { %1289 = vmatpush3.msra.mxu0 %v419_v33  ;;  %1334 = vmatmul.mubr.msk.f32.vlgmr.msra.gmra.mxu1 %vm229_vm1, %v1523_v44 }
  0xec   : > { %1290 = vmatprep.subr.mxu0 %v1521_v1  ;;  %1298 = vmatprep.mubr.msk.f32.mxu0 %vm1522_vm0, %v1521_v1 }
  0xed   : > { %1291 = vmatpush3.msra.mxu0 %v426_v40 }
  0xee   : > { %1292 = vmatprep.subr.mxu0 %v1521_v1 }
  0xef   : > { %1293 = vmatpush3.msra.mxu0 %v433_v45 }
  0xf0   : > { %1294 = vmatprep.subr.mxu0 %v1521_v1 }
  0xf1   : > { %1295 = vmatpush3.msra.mxu0 %v440_v56 }
  0xf2   : > { %1296 = vmatprep.subr.mxu0 %v1521_v1 }
  0xf3   : > { %1297 = vmatpush3.msra.mxu0 %v447_v62 }
  0xf4   : > { %1299 = vmatmul.mubr.msk.f32.vlgmr.msra.gmra.mxu0 %vm229_vm1, %v1523_v44 }
 0x169   : > { %v486_v5 = vpop.f32.mrf.mxu1 }
 0x16b   : > { %v1195_v6 = vpop.f32.mrf.mxu1 }
 0x172   : > { %v335_v10 = vpop.f32.mrf.mxu0 }
 0x173   : > { %v487_v20 = vadd.f32 %v486_v5, %v335_v10 }
 0x174   : > { %v1160_v11 = vpop.f32.mrf.mxu0 }
 0x189   : > { %v679_v12 = vpop.f32.mrf.mxu1 }
 0x18b   : > { %v1265_v16 = vpop.f32.mrf.mxu1 }
 0x193   : > { %v590_v17 = vpop.f32.mrf.mxu0 }
 0x194   : > { %v591_v21 = vadd.f32 %v590_v17, %v487_v20 }
 0x195   : > { %v1230_v18 = vpop.f32.mrf.mxu0 }
 0x196   : > { %v680_v22 = vadd.f32 %v679_v12, %v591_v21 }
 0x1ab   : > { %v885_v19 = vpop.f32.mrf.mxu1 }
 0x1ad   : > { %v1335_v1 = vpop.f32.mrf.mxu1 }
 0x1b4   : > { %v798_v23 = vpop.f32.mrf.mxu0 }
 0x1b5   : > { %v799_v24 = vadd.f32 %v798_v23, %v680_v22 }
 0x1b6   : > { %v1300_v25 = vpop.f32.mrf.mxu0 }
 0x1b7   : > { %v886_v26 = vadd.f32 %v885_v19, %v799_v24 }
 0x1b9   : > { %v890_v28 = vmul.f32 11.313708, %v886_v26 }
 0x1bb   : > { %v891_v29 = vadd.f32 %v890_v28, %v889_v27 }
 0x1bd   : > { %892 = vst [vmem:[%s211_s28] sm:$0xff] %v891_v29 }
 0x1be   : > { %1448 = shalt.err (!%p1445_p3)
}
 0x1bf   : > { %s1449_s10 = scalar_lea.hbm %s906_s5, 128  ;;  %s1453_s19 = scalar_lea.hbm %s2046_s3, 256 }
 0x1c0   : > { %p1450_p5 = scmp.ne.s32.totalorder %s906_s5, %s1449_s10  ;;  %p1454_p9 = scmp.lt.s32.totalorder %s906_s5, %s2046_s3 }
 0x1c1   : > { %p1455_p12 = scmp.lt.s32.totalorder %s1453_s19, %s1449_s10 }
 0x1c2   : > { %p1451_p6 = pnand %p1450_p5, %p1585_p4 }
 0x1c3   : > { %p1456_p10 = por %p1455_p12, %p1454_p9 }
 0x1c4   : > { %p1452_p7 = pneg %p1451_p6 }
 0x1c6   : > { %p1457_p11 = pnand %p1456_p10, %p1452_p7 }
 0x1c8   : > { %1460 = shalt.err (!%p1457_p11)
}
 0x1c9   : > { %1340 = dma.vmem_to_hbm [thread:$0]  (%p1585_p4), %s909_s29, 128, %s906_s5, %s894_s6  }
 0x1ca PF: > { %p1352_p13 = scmp.ge.s32.totalorder %s1515_s17, 2  ;;  %s920_s26 = sand.u32 1, %s1495_s12  }
 0x1cb   : > { %s921_s27 = scalar_lea.sflag [#allocation4], %s920_s26 }
 0x1cc   : > { %p1347_p0 = pnand %p1352_p13, %p1592_p8 }
 0x1ce   : > { %p1348_p1 = pneg %p1347_p0 }
 0x1d0   : > { %1490 = dma.done.wait (%p1348_p1), %s921_s27, 128  }
 0x1d1   : > { %1492 = vsyncadd (%p1348_p1), %s921_s27, 4294967168  ;;  %s17_s17 = sadd.s32 1, %s1515_s17   ;;  %s2051_s12 = smov %s1499_s13 }
 0x1d2   : > { %p14_p2 = scmp.ge.s32.totalorder %s17_s17, 4   ;;  %s2052_s13 = smov %s1503_s14 }
 0x1d3   : > { %s2053_s14 = smov %s1598_s25  ;;  %s2054_s15 = smov %s1511_s16 }
 0x1d4   : > { %s2055_s16 = smov %s2057_s20  ;;  %16 = sbr.rel (!%p14_p2) target bundleno = 5 (0x5), region = 75 }
 0x1d9   :  { %926 = vsyncpa [#allocation3], 1 }
 0x1da   :  { %928 = vsyncpa [#allocation3 + $0x1], 1 }
 0x1db   :  { %929 = vsyncpa [#allocation4], 1 }
 0x1dc   :  { %931 = vsyncpa [#allocation4 + $0x1], 1 }

</bundles_post_ra>
